<compile_context>
chip_gen: v6e
topology: v6e:2x2x1
jax: 0.10.0
libtpu: 0.0.40
codegen_flags: <defaults>
</compile_context>

<pallas_src>
import math

import jax
import jax.numpy as jnp
from jax.experimental import pallas as pl
from jax.experimental.pallas import tpu as pltpu

_LANE = 128
_SUBLANE = 8


def _rff_kernel(t_ref, const_ref, o_ref):
    # t_ref:     (TB, 1)  f32   batch tile of timesteps
    # const_ref: (2, 2F)  f32   row 0 = duplicated frequencies [w, w]
    #                           row 1 = phase [0..0, pi/2..pi/2]
    # o_ref:     (TB, 2F) out dtype
    # sin(t*w + 0)    == sin(t @ W^T)  -> first F lanes
    # sin(t*w + pi/2) == cos(t @ W^T)  -> last  F lanes
    w = const_ref[0:1, :]
    phase = const_ref[1:2, :]
    o_ref[...] = jnp.sin(t_ref[...] * w + phase).astype(o_ref.dtype)


def _round_up(x, m):
    return ((x + m - 1) // m) * m


def _vmem_capacity_bytes():
    # Generation-aware VMEM capacity (v5e/v6e: 128 MiB, v7x: 64 MiB per TC).
    try:
        return int(pltpu.get_tpu_info().vmem_capacity_bytes)
    except Exception:
        return 64 << 20  # conservative fallback (v7x per-TensorCore VMEM)


def random_fourier_features(t, w, *, block_b=None, out_dtype=jnp.float32,
                            force_pallas=False,
                            min_pallas_out_bytes=1 << 20):
    """Random Fourier features: cat([sin(t @ W^T), cos(t @ W^T)], -1).

    t: (B, 1) (or (B,)) any float dtype.  w: nn.Linear(1, F) weight in any of
    the layouts (F, 1), (1, F) or (F,).  Returns (B, 2F) in `out_dtype`
    (float32 by default, matching the PyTorch module).

    block_b: optional manual batch-tile cap; by default the tile is sized from
    the device's VMEM capacity, counting the full lane-padded footprint of the
    (TB, 1) t block (512 B/row) plus the (TB, 2F) output block, both
    double-buffered.
    """
    t = jnp.asarray(t).astype(jnp.float32)  # mirrors t.float() in the reference
    if t.ndim == 1:
        t = t[:, None]
    B = t.shape[0]

    w = jnp.asarray(w, jnp.float32).reshape(-1)  # (F,1)/(1,F)/(F,) all accepted
    F = w.shape[0]
    F2 = 2 * F

    out_dtype = jnp.dtype(out_dtype)
    out_bytes = B * F2 * out_dtype.itemsize

    # Fused constant: one input stream instead of two.
    w_ext = jnp.concatenate([w, w])
    phase = jnp.concatenate([jnp.zeros((F,), jnp.float32),
                             jnp.full((F,), 0.5 * math.pi, jnp.float32)])
    const = jnp.stack([w_ext, phase])  # (2, 2F)

    # Small-batch fallback: below ~1 MiB of output the fixed pallas_call /
    # pipeline startup overhead dominates; let XLA fuse the whole thing.
    if not force_pallas and out_bytes < min_pallas_out_bytes:
        return jnp.sin(t * w_ext[None, :] + phase[None, :]).astype(out_dtype)

    # --- Tile-size selection (generation aware) -----------------------------
    vmem_cap = _vmem_capacity_bytes()
    # Per batch row, double-buffered:
    #   output tile: F2 * itemsize bytes/row
    #   t tile (TB, 1): lane-padded to a full 128-lane word row = 512 B/row
    per_row_db = 2 * (F2 * out_dtype.itemsize + _LANE * 4)
    budget = vmem_cap // 4  # headroom for constants / compiler scratch
    tb_cap = max(_SUBLANE, (budget // per_row_db) // _SUBLANE * _SUBLANE)
    if block_b is not None:
        tb_cap = min(tb_cap, max(_SUBLANE, _round_up(int(block_b), _SUBLANE)))

    if B <= _SUBLANE:
        TB = B  # single full-batch block (block shape == array shape is legal)
    else:
        TB = min(tb_cap, _round_up(B, _SUBLANE))
        # Guarantee >= 4 blocks so the "parallel" batch axis shards across both
        # TensorCores on v7x (and keeps the pipeline busy everywhere).
        quarter = max(_SUBLANE, _round_up(pl.cdiv(B, 4), _SUBLANE))
        TB = min(TB, quarter)

    grid = (pl.cdiv(B, TB),)

    # Explicit scoped-VMEM limit: covers the double-buffered tiles plus the
    # (2, F2) constant (sublane-padded to 8 rows), with margin; clamped to the
    # physical capacity so a tile tuned on v6e cannot overshoot v7x.
    const_bytes = 2 * _SUBLANE * F2 * 4
    usage = TB * per_row_db + const_bytes
    vmem_limit = int(min(vmem_cap - (2 << 20),
                         max(usage + (2 << 20), 16 << 20)))

    cost = pl.CostEstimate(
        flops=2 * B * F2,          # one mul + one add per output element
        transcendentals=B * F2,    # one sin per output element
        bytes_accessed=4 * B + 4 * 2 * F2 + out_bytes,
    )

    return pl.pallas_call(
        _rff_kernel,
        out_shape=jax.ShapeDtypeStruct((B, F2), out_dtype),
        grid_spec=pltpu.PrefetchScalarGridSpec(
            num_scalar_prefetch=0,
            grid=grid,
            in_specs=[
                pl.BlockSpec((TB, 1), lambda i: (i, 0)),   # batch tile of t
                pl.BlockSpec((2, F2), lambda i: (0, 0)),   # fused constants
            ],
            out_specs=pl.BlockSpec((TB, F2), lambda i: (i, 0)),
        ),
        compiler_params=pltpu.CompilerParams(
            dimension_semantics=("parallel",),   # batch blocks are independent
            vmem_limit_bytes=vmem_limit,
        ),
        cost_estimate=cost,
    )(t, const)


def _reference(t, w):
    w = jnp.asarray(w, jnp.float32).reshape(-1)
    proj = t.astype(jnp.float32) @ w.reshape(1, -1)  # (B, F)
    return jnp.concatenate([jnp.sin(proj), jnp.cos(proj)], axis=-1)


if __name__ == "__main__":
    key = jax.random.PRNGKey(0)
    k_w, k_t, k_t2 = jax.random.split(key, 3)

    F = 192
    std = 2.0 * math.pi
    # nn.Linear(1, 192).weight has shape (F, 1); the wrapper accepts that layout.
    w = jax.random.normal(k_w, (F, 1), dtype=jnp.float32) * std

    # Small example: batch of 8 scalar timesteps, (B, 1) feature-last.
    t = jax.random.normal(k_t, (8, 1), dtype=jnp.float32)
    out = jax.block_until_ready(random_fourier_features(t, w, force_pallas=True))
    ref = _reference(t, w)
    assert out.shape == (8, 2 * F)
    assert jnp.allclose(out, ref, atol=1e-5, rtol=1e-5)

    # Exercise the tiled grid (multiple blocks + ragged masked tail).
    t2 = jax.random.normal(k_t2, (20, 1), dtype=jnp.float32)
    out2 = jax.block_until_ready(
        random_fourier_features(t2, w, block_b=8, force_pallas=True))
    ref2 = _reference(t2, w)
    assert out2.shape == (20, 2 * F)
    assert jnp.allclose(out2, ref2, atol=1e-5, rtol=1e-5)

    # Small-batch XLA fallback path (no pallas_call) agrees as well.
    out3 = jax.block_until_ready(random_fourier_features(t2, w))
    assert jnp.allclose(out3, ref2, atol=1e-5, rtol=1e-5)

    print("KERNEL_OK")
</pallas_src>

<mosaic_0001>
module attributes {stable_mosaic.version = 11 : i64} {
  func.func @_rff_kernel(%arg0: i32, %arg1: memref<8x1xf32, #tpu.memory_space<vmem>>, %arg2: memref<2x384xf32, #tpu.memory_space<vmem>>, %arg3: memref<8x384xf32, #tpu.memory_space<vmem>>) attributes {dimension_semantics = [#tpu.dimension_semantics<parallel>], iteration_bounds = array<i64: 1>, scalar_prefetch = 0 : i64, scratch_operands = 0 : i64, tpu.core_type = #tpu.core_type<tc>, window_params = [{transform_indices = @transform_0, window_bounds = array<i64: 8, 1>}, {pipeline_mode = #tpu.pipeline_mode<synchronous>, transform_indices = @transform_1, window_bounds = array<i64: 2, 384>}, {transform_indices = @transform_2, window_bounds = array<i64: 8, 384>}]} {
    %c0 = arith.constant 0 : index
    %c0_0 = arith.constant 0 : index
    %0 = vector.load %arg2[%c0, %c0_0] : memref<2x384xf32, #tpu.memory_space<vmem>>, vector<1x384xf32>
    %c1 = arith.constant 1 : index
    %c0_1 = arith.constant 0 : index
    %1 = vector.load %arg2[%c1, %c0_1] : memref<2x384xf32, #tpu.memory_space<vmem>>, vector<1x384xf32>
    %c0_2 = arith.constant 0 : index
    %c0_3 = arith.constant 0 : index
    %2 = vector.load %arg1[%c0_2, %c0_3] : memref<8x1xf32, #tpu.memory_space<vmem>>, vector<8x1xf32>
    %3 = vector.broadcast %2 : vector<8x1xf32> to vector<8x384xf32>
    %4 = vector.broadcast %0 : vector<1x384xf32> to vector<8x384xf32>
    %5 = arith.mulf %3, %4 : vector<8x384xf32>
    %6 = vector.broadcast %1 : vector<1x384xf32> to vector<8x384xf32>
    %7 = arith.addf %5, %6 : vector<8x384xf32>
    %8 = math.sin %7 : vector<8x384xf32>
    %c0_4 = arith.constant 0 : index
    %c0_5 = arith.constant 0 : index
    %9 = vector.load %arg3[%c0_4, %c0_5] : memref<8x384xf32, #tpu.memory_space<vmem>>, vector<8x384xf32>
    tpu.vector_store %arg3[%c0_4, %c0_5], %8 {strides = array<i32>} : memref<8x384xf32, #tpu.memory_space<vmem>>, vector<8x384xf32>,
    return
  }
  func.func @transform_0(%arg0: i32) -> (i32, i32) {
    %c0_i32 = arith.constant 0 : i32
    %c0_i32_0 = arith.constant 0 : i32
    return %arg0, %c0_i32 : i32, i32
  }
  func.func @transform_1(%arg0: i32) -> (i32, i32) {
    %c0_i32 = arith.constant 0 : i32
    %c0_i32_0 = arith.constant 0 : i32
    %c0_i32_1 = arith.constant 0 : i32
    return %c0_i32, %c0_i32_0 : i32, i32
  }
  func.func @transform_2(%arg0: i32) -> (i32, i32) {
    %c0_i32 = arith.constant 0 : i32
    %c0_i32_0 = arith.constant 0 : i32
    return %arg0, %c0_i32 : i32, i32
  }
}

</mosaic_0001>

<bundles_post_ra>
// kernel: tpu_custom_call.1
= control target key start
LH: loop header
LB: loop body
LE: loop exit
PB: predicated region body
PF: predicated region fallthrough
CT: control target
= control target key end

     0   :  { %s673_s0 = inlined_call_operand.vmem [shape: f32[8,1], index: 0, kind: input, shape index: {}]   ;;  %s674_s1 = inlined_call_operand.vmem [shape: f32[2,384], index: 1, kind: input, shape index: {}]   ;;  %s675_s2 = inlined_call_operand.hbm [shape: f32[8,384], index: 2, kind: output, shape index: {}]  }
   0x1   :  { %v15_v0 = vld [vmem:[%s673_s0] sm:$0xff] }
   0x2   :  { %7 = vsyncpa [#allocation3], 0  ;;  %v456_v1 = vmov 0   ;;  %v22_v2 = vlaneseq  ;;  %v12_v7 = vld [vmem:[%s674_s1] ss:$2 sm:$0x7] }
   0x3   :  { %421 = vset.pattern.permute.xlu0 %v456_v1  ;;  %v388_v8 = vld [vmem:[%s674_s1 + $0x1] ss:$2 sm:$0x7]  ;;  %v457_v47 = vmov 683565275   ;;  %s463_s0 = smov [#allocation2]  }
   0x4   :  { %18 = vperm.xlu0 %421, %v15_v0   ;;  %v23_v3 = vshrl.u32 %v22_v2, 7  ;;  %v458_v51 = vmov 2475754826   ;;  %v459_v53 = vmov 2131351028   ;;  %s380_s1 = sshll.u32 %s463_s0, 4  ;;  %s381_s1 = int_to_ptr.vmem [resolvable:$true] %s380_s1 }
   0x5   :  { %v460_v55 = vmov 2102212464   ;;  %v461_v57 = vmov 920167782   ;;  %v462_v0 = vmov 1326507024   ;;  %p439_p1 = scmp.lt.s32.totalorder %s381_s1, %s381_s1 }
   0x6   :  { %v24_v4 = vsub.s32 0, %v23_v3  ;;  %v28_v5 = vsub.s32 1, %v23_v3  ;;  %v32_v6 = vsub.s32 2, %v23_v3  ;;  %s434_s15 = scalar_lea.vmem %s381_s1, 384 }
   0x7   :  { %p435_p0 = scmp.ne.s32.totalorder %s381_s1, %s434_s15  ;;  %p440_p2 = scmp.lt.s32.totalorder %s434_s15, %s434_s15 }
   0x8   :  { %v25_v9 = vrot.slane %v12_v7, %v24_v4  ;;  %v29_v10 = vrot.slane %v12_v7, %v28_v5  ;;  %v33_v11 = vrot.slane %v12_v7, %v32_v6  ;;  %v44_v12 = vrot.slane %v388_v8, %v24_v4 }
   0x9   :  { %v48_v13 = vrot.slane %v388_v8, %v28_v5  ;;  %v52_v15 = vrot.slane %v388_v8, %v32_v6  ;;  %p441_p3 = por %p440_p2, %p439_p1 }
   0xb   :  { %p442_p4 = pnand %p441_p3, %p435_p0 }
  0x7f   :  { %v19_v14 = vpop.permute.xlu0 %18 }
  0x80   :  { %v37_v16 = vmul.f32 %v25_v9, %v19_v14  ;;  %v38_v17 = vmul.f32 %v29_v10, %v19_v14  ;;  %v39_v18 = vmul.f32 %v33_v11, %v19_v14 }
  0x82   :  { %v488_v19 = vadd.f32 %v44_v12, %v37_v16  ;;  %v490_v20 = vadd.f32 %v48_v13, %v38_v17  ;;  %v492_v21 = vadd.f32 %v52_v15, %v39_v18 }
  0x84   :  { %v59_v22 = vand.u32 2147483647, %v488_v19  ;;  %v62_v23 = vand.u32 2139095040, %v488_v19  ;;  %v163_v24 = vand.u32 2147483647, %v490_v20  ;;  %v166_v25 = vand.u32 2139095040, %v490_v20 }
  0x85   :  { %v270_v30 = vand.u32 2139095040, %v492_v21 }
  0x86   :  { %v63_v26 = vshrl.u32 %v62_v23, 23  ;;  %v66_v27 = vand.u32 8388607, %v59_v22  ;;  %v167_v28 = vshrl.u32 %v166_v25, 23  ;;  %v170_v29 = vand.u32 8388607, %v163_v24 }
  0x87   :  { %v271_v33 = vshrl.u32 %v270_v30, 23 }
  0x88   :  { %v389_v31 = vadd.s32 4294967169, %v63_v26  ;;  %v393_v32 = vadd.s32 4294967169, %v167_v28  ;;  %v67_v35 = vor.u32 8388608, %v66_v27  ;;  %v171_v36 = vor.u32 8388608, %v170_v29 }
  0x89   :  { %v397_v38 = vadd.s32 4294967169, %v271_v33 }
  0x8a   :  { %v69_v34 = vadd.s32 1, %v389_v31  ;;  %v173_v37 = vadd.s32 1, %v393_v32  ;;  %v503_v43 = vshll.u32 %v67_v35, 8  ;;  %v505_v44 = vshll.u32 %v171_v36, 8 }
  0x8b   :  { %v507_v45 = vadd.s32 1, %v397_v38 }
  0x8c   :  { %vm70_vm0 = vcmp.gt.s32.totalorder %v69_v34, 0  ;;  %vm174_vm1 = vcmp.gt.s32.totalorder %v173_v37, 0 }
  0x8d   :  { %v71_v39 = vsel %vm70_vm0, %v69_v34, 0  ;;  %v175_v42 = vsel %vm174_vm1, %v173_v37, 0  ;;  %vm278_vm6 = vcmp.gt.s32.totalorder %v507_v45, 0 }
  0x8e   :  { %v72_v40 = vshrl.u32 %v71_v39, 5  ;;  %v73_v41 = vand.u32 31, %v71_v39  ;;  %v510_v49 = vshrl.u32 %v175_v42, 5  ;;  %v177_v50 = vand.u32 31, %v175_v42 }
  0x90   :  { %v74_v46 = vsub.s32 32, %v73_v41  ;;  %v76_v48 = vshll.u32 %v457_v47, %v73_v41  ;;  %v79_v52 = vshll.u32 %v458_v51, %v73_v41  ;;  %v82_v54 = vshll.u32 %v459_v53, %v73_v41 }
  0x91   :  { %v85_v56 = vshll.u32 %v460_v55, %v73_v41  ;;  %v88_v58 = vshll.u32 %v461_v57, %v73_v41  ;;  %vm91_vm2 = vcmp.lt.s32.totalorder %v72_v40, 1  ;;  %vm92_vm3 = vcmp.lt.s32.totalorder %v72_v40, 2 }
  0x92   :  { %v77_v59 = vshrl.u32 %v458_v51, %v74_v46  ;;  %v80_v60 = vshrl.u32 %v459_v53, %v74_v46  ;;  %v83_v61 = vshrl.u32 %v460_v55, %v74_v46  ;;  %v75_v62 = vshrl.u32 %v457_v47, %v74_v46 }
  0x93   :  { %v86_v63 = vshrl.u32 %v461_v57, %v74_v46  ;;  %v89_v1 = vshrl.u32 %v462_v0, %v74_v46  ;;  %v178_v5 = vsub.s32 32, %v177_v50  ;;  %vm93_vm4 = vcmp.lt.s32.totalorder %v72_v40, 3 }
  0x94   :  { %v78_v2 = vor.u32 %v77_v59, %v76_v48  ;;  %v81_v3 = vor.u32 %v80_v60, %v79_v52  ;;  %v84_v4 = vor.u32 %v83_v61, %v82_v54  ;;  %vm94_vm5 = vcmp.lt.s32.totalorder %v72_v40, 4 }
  0x95   :  { %v87_v6 = vor.u32 %v86_v63, %v85_v56  ;;  %v90_v7 = vor.u32 %v89_v1, %v88_v58  ;;  %v180_v15 = vshll.u32 %v457_v47, %v177_v50  ;;  %v181_v18 = vshrl.u32 %v458_v51, %v178_v5 }
  0x96   :  { %v95_v8 = vsel %vm91_vm2, %v75_v62, %v78_v2  ;;  %v96_v9 = vsel %vm94_vm5, %v84_v4, 2102212464  ;;  %v99_v10 = vsel %vm91_vm2, %v78_v2, %v81_v3  ;;  %v103_v11 = vsel %vm91_vm2, %v81_v3, %v84_v4 }
  0x97   :  { %v97_v12 = vsel %vm93_vm4, %v81_v3, %v96_v9  ;;  %v100_v13 = vsel %vm94_vm5, %v87_v6, 920167782  ;;  %v104_v14 = vsel %vm94_vm5, %v90_v7, 1326507024  ;;  %v183_v23 = vshll.u32 %v458_v51, %v177_v50 }
  0x98   :  { %v101_v16 = vsel %vm93_vm4, %v84_v4, %v100_v13  ;;  %v105_v17 = vsel %vm93_vm4, %v87_v6, %v104_v14  ;;  %v98_v25 = vsel %vm92_vm3, %v95_v8, %v97_v12  ;;  %v184_v28 = vshrl.u32 %v459_v53, %v178_v5 }
  0x99   :  { %v102_v26 = vsel %vm92_vm3, %v99_v10, %v101_v16  ;;  %v106_v27 = vsel %vm92_vm3, %v103_v11, %v105_v17  ;;  %v182_v33 = vor.u32 %v181_v18, %v180_v15  ;;  %v186_v35 = vshll.u32 %v459_v53, %v177_v50 }
  0x9a   :  { %v534_v29 = vmul.u32.u64.low %v503_v43, %v106_v27  ;;  %v535_v30 = vmul.u32.u64.high %v503_v43, %v106_v27, %v534_v29  ;;  %v538_v31 = vmul.u32.u64.low %v503_v43, %v102_v26  ;;  %v539_v32 = vmul.u32.u64.high %v503_v43, %v102_v26, %v538_v31 }
  0x9b   :  { %v185_v34 = vor.u32 %v184_v28, %v183_v23  ;;  %v187_v36 = vshrl.u32 %v460_v55, %v178_v5  ;;  %v179_v37 = vshrl.u32 %v457_v47, %v178_v5  ;;  %v189_v38 = vshll.u32 %v460_v55, %v177_v50 }
  0x9c   :  { %v190_v39 = vshrl.u32 %v461_v57, %v178_v5  ;;  %v193_v40 = vshrl.u32 %v462_v0, %v178_v5  ;;  %v114_v41 = vmul.u32 %v503_v43, %v98_v25  ;;  %v192_v46 = vshll.u32 %v461_v57, %v177_v50 }
  0x9d   :  { %v188_v42 = vor.u32 %v187_v36, %v186_v35  ;;  %vm195_vm7 = vcmp.lt.s32.totalorder %v510_v49, 1  ;;  %vm116_vm8 = vc.u32 %v535_v30, %v538_v31  ;;  %v117_v48 = vadd.s32 1, %v539_v32 }
  0x9e   :  { %v191_v52 = vor.u32 %v190_v39, %v189_v38  ;;  %vm196_vm9 = vcmp.lt.s32.totalorder %v510_v49, 2  ;;  %v194_v54 = vor.u32 %v193_v40, %v192_v46  ;;  %vm197_vm10 = vcmp.lt.s32.totalorder %v510_v49, 3 }
  0x9f   :  { %vm198_vm11 = vcmp.lt.s32.totalorder %v510_v49, 4  ;;  %v203_v56 = vsel %vm195_vm7, %v182_v33, %v185_v34  ;;  %v118_v43 = vsel %vm116_vm8, %v117_v48, %v539_v32  ;;  %v207_v59 = vsel %vm195_vm7, %v185_v34, %v188_v42 }
  0xa0   :  { %v200_v58 = vsel %vm198_vm11, %v188_v42, 2102212464  ;;  %v204_v50 = vsel %vm198_vm11, %v191_v52, 920167782  ;;  %v119_v60 = vadd.s32 %v118_v43, %v114_v41  ;;  %v199_v61 = vsel %vm195_vm7, %v179_v37, %v182_v33 }
  0xa1   :  { %v205_v62 = vsel %vm197_vm10, %v188_v42, %v204_v50  ;;  %v208_v63 = vsel %vm198_vm11, %v194_v54, 1326507024  ;;  %v201_v1 = vsel %vm197_vm10, %v185_v34, %v200_v58  ;;  %v279_v4 = vsel %vm278_vm6, %v507_v45, 0 }
  0xa2   :  { %v206_v2 = vsel %vm196_vm9, %v203_v56, %v205_v62  ;;  %v209_v3 = vsel %vm197_vm10, %v191_v52, %v208_v63  ;;  %v120_v5 = vadd.s32 536870912, %v119_v60  ;;  %v267_v11 = vand.u32 2147483647, %v492_v21 }
  0xa3   :  { %v210_v6 = vsel %vm196_vm9, %v207_v59, %v209_v3  ;;  %v566_v7 = vmul.u32.u64.low %v505_v44, %v206_v2  ;;  %v567_v8 = vmul.u32.u64.high %v505_v44, %v206_v2, %v566_v7  ;;  %v202_v45 = vsel %vm196_vm9, %v199_v61, %v201_v1 }
  0xa4   :  { %v571_v9 = vmul.u32.u64.low %v505_v44, %v210_v6  ;;  %v572_v10 = vmul.u32.u64.high %v505_v44, %v210_v6, %v571_v9  ;;  %v575_v12 = vshrl.u32 %v120_v5, 30  ;;  %v281_v13 = vand.u32 31, %v279_v4 }
  0xa5   :  { %v221_v15 = vadd.s32 1, %v567_v8  ;;  %v218_v17 = vmul.u32 %v505_v44, %v202_v45  ;;  %v274_v18 = vand.u32 8388607, %v267_v11  ;;  %v280_v44 = vshrl.u32 %v279_v4, 5 }
  0xa6   :  { %v122_v14 = vshll.u32 %v575_v12, 30  ;;  %v282_v16 = vsub.s32 32, %v281_v13  ;;  %vm220_vm12 = vc.u32 %v572_v10, %v566_v7  ;;  %v284_v34 = vshll.u32 %v457_v47, %v281_v13 }
  0xa7   :  { %v222_v25 = vsel %vm220_vm12, %v221_v15, %v567_v8  ;;  %v275_v33 = vor.u32 8388608, %v274_v18  ;;  %v287_v36 = vshll.u32 %v458_v51, %v281_v13  ;;  %v290_v37 = vshll.u32 %v459_v53, %v281_v13 }
  0xa8   :  { %v123_v23 = vsub.s32 %v119_v60, %v122_v14  ;;  %v223_v26 = vadd.s32 %v222_v25, %v218_v17  ;;  %v285_v49 = vshrl.u32 %v458_v51, %v282_v16  ;;  %v288_v28 = vshrl.u32 %v459_v53, %v282_v16 }
  0xa9   :  { %v291_v29 = vshrl.u32 %v460_v55, %v282_v16  ;;  %v294_v38 = vshrl.u32 %v461_v57, %v282_v16  ;;  %v293_v41 = vshll.u32 %v460_v55, %v281_v13  ;;  %v297_v42 = vshrl.u32 %v462_v0, %v282_v16 }
  0xaa   :  { %v125_v27 = vsub.s32 0, %v123_v23  ;;  %v224_v32 = vadd.s32 536870912, %v223_v26  ;;  %v286_v40 = vor.u32 %v285_v49, %v284_v34  ;;  %v289_v48 = vor.u32 %v288_v28, %v287_v36 }
  0xab   :  { %v292_v52 = vor.u32 %v291_v29, %v290_v37  ;;  %v296_v54 = vshll.u32 %v461_v57, %v281_v13  ;;  %v295_v43 = vor.u32 %v294_v38, %v293_v41  ;;  %vm302_vm13 = vcmp.lt.s32.totalorder %v280_v44, 4 }
  0xac   :  { %v390_v35 = vmin.u32 %v125_v27, %v123_v23  ;;  %v594_v39 = vshrl.u32 %v224_v32, 30  ;;  %v315_v53 = vshll.u32 %v275_v33, 8  ;;  %vm299_vm14 = vcmp.lt.s32.totalorder %v280_v44, 1 }
  0xad   :  { %v298_v58 = vor.u32 %v297_v42, %v296_v54  ;;  %vm301_vm15 = vcmp.lt.s32.totalorder %v280_v44, 3  ;;  %v308_v59 = vsel %vm302_vm13, %v295_v43, 920167782  ;;  %v115_v55 = vadd.s32 %v538_v31, %v535_v30 }
  0xae   :  { %v127_v46 = vclz %v390_v35  ;;  %v226_v56 = vshll.u32 %v594_v39, 30  ;;  %v307_v0 = vsel %vm299_vm14, %v286_v40, %v289_v48  ;;  %v309_v57 = vsel %vm301_vm15, %v292_v52, %v308_v59 }
  0xaf   :  { %vm300_vm1 = vcmp.lt.s32.totalorder %v280_v44, 2  ;;  %v311_v62 = vsel %vm299_vm14, %v289_v48, %v292_v52  ;;  %v304_v2 = vsel %vm302_vm13, %v292_v52, 2102212464  ;;  %v312_v3 = vsel %vm302_vm13, %v298_v58, 1326507024 }
  0xb0   :  { %v391_v51 = vadd.s32 4294967294, %v127_v46  ;;  %v227_v50 = vsub.s32 %v223_v26, %v226_v56  ;;  %v283_v5 = vshrl.u32 %v457_v47, %v282_v16  ;;  %v310_v30 = vsel %vm300_vm1, %v307_v0, %v309_v57 }
  0xb1   :  { %v313_v31 = vsel %vm301_vm15, %v295_v43, %v312_v3  ;;  %v305_v15 = vsel %vm301_vm15, %v289_v48, %v304_v2  ;;  %v617_v16 = vmul.u32.u64.low %v315_v53, %v310_v30  ;;  %v618_v49 = vmul.u32.u64.high %v315_v53, %v310_v30, %v617_v16 }
  0xb2   :  { %vm392_vm0 = vcmp.lt.s32.totalorder %v391_v51, 0  ;;  %v229_v61 = vsub.s32 0, %v227_v50  ;;  %v314_v45 = vsel %vm300_vm1, %v311_v62, %v313_v31  ;;  %v303_v14 = vsel %vm299_vm14, %v283_v5, %v286_v40 }
  0xb3   :  { %v130_v60 = vsel %vm392_vm0, 0, %v391_v51  ;;  %v614_v25 = vmul.u32.u64.low %v315_v53, %v314_v45  ;;  %v615_v26 = vmul.u32.u64.high %v315_v53, %v314_v45, %v614_v25  ;;  %v306_v27 = vsel %vm300_vm1, %v303_v14, %v305_v15 }
  0xb4   :  { %v131_v63 = vsub.s32 32, %v130_v60  ;;  %v135_v1 = vsub.s32 4294967266, %v130_v60  ;;  %v394_v4 = vmin.u32 %v229_v61, %v227_v50  ;;  %v132_v6 = vshll.u32 %v123_v23, %v130_v60 }
  0xb5   :  { %vm324_vm3 = vc.u32 %v615_v26, %v617_v16  ;;  %v219_v33 = vadd.s32 %v566_v7, %v572_v10  ;;  %v325_v36 = vadd.s32 1, %v618_v49  ;;  %v322_v38 = vmul.u32 %v315_v53, %v306_v27 }
  0xb6   :  { %v133_v8 = vshrl.u32 %v115_v55, %v131_v63  ;;  %v136_v9 = vadd.s32 127, %v135_v1  ;;  %v231_v13 = vclz %v394_v4  ;;  %v145_v48 = vsub.s32 4, %v575_v12 }
  0xb7   :  { %v326_v44 = vsel %vm324_vm3, %v325_v36, %v618_v49  ;;  %vm61_vm4 = vcmp.lt.s32.totalorder %v488_v19, 0  ;;  %vm632_vm5 = vcmp.le.f32.partialorder %v59_v22, 0.7853982  ;;  %v249_v62 = vsub.s32 4, %v594_v39 }
  0xb8   :  { %v134_v17 = vor.u32 %v133_v8, %v132_v6  ;;  %v137_v18 = vshll.u32 %v136_v9, 23  ;;  %v395_v47 = vadd.s32 4294967294, %v231_v13  ;;  %v327_v52 = vadd.s32 %v326_v44, %v322_v38 }
  0xb9   :  { %v146_v53 = vsel %vm61_vm4, %v145_v48, %v575_v12  ;;  %vm165_vm6 = vcmp.lt.s32.totalorder %v490_v20, 0  ;;  %vm649_vm7 = vcmp.le.f32.partialorder %v163_v24, 0.7853982  ;;  %vm151_vm11 = vweird.f32 %v488_v19 }
  0xba   :  { %v138_v23 = vor.u32 4788187, %v137_v18  ;;  %vm396_vm2 = vcmp.lt.s32.totalorder %v395_v47, 0  ;;  %v141_v29 = vcvt.s32.f32 %v134_v17  ;;  %v328_v43 = vadd.s32 536870912, %v327_v52 }
  0xbb   :  { %v234_v32 = vsel %vm396_vm2, 0, %v395_v47  ;;  %v148_v0 = vsel %vm632_vm5, 0, %v146_v53  ;;  %v250_v5 = vsel %vm165_vm6, %v249_v62, %v594_v39  ;;  %v323_v39 = vadd.s32 %v617_v16, %v615_v26 }
  0xbc   :  { %v139_v28 = vand.u32 2147483647, %v138_v23  ;;  %v235_v34 = vsub.s32 32, %v234_v32  ;;  %v239_v35 = vsub.s32 4294967266, %v234_v32  ;;  %v236_v40 = vshll.u32 %v227_v50, %v234_v32 }
  0xbd   :  { %v640_v50 = vshrl.u32 %v328_v43, 30  ;;  %v152_v63 = vadd.s32 3, %v148_v0  ;;  %v252_v6 = vsel %vm649_vm7, 0, %v250_v5  ;;  %vm255_vm0 = vweird.f32 %v490_v20 }
  0xbe   :  { %v142_v37 = vmul.f32 %v141_v29, %v139_v28  ;;  %v237_v41 = vshrl.u32 %v219_v33, %v235_v34  ;;  %v240_v42 = vadd.s32 127, %v239_v35  ;;  %v256_v14 = vadd.s32 3, %v252_v6 }
  0xbf   :  { %v330_v22 = vshll.u32 %v640_v50, 30  ;;  %v153_v30 = vand.u32 3, %v152_v63  ;;  %vm269_vm1 = vcmp.lt.s32.totalorder %v492_v21, 0  ;;  %vm268_vm2 = vcmp.le.f32.partialorder %v267_v11, 0.7853982 }
  0xc0   :  { %v143_v46 = vxor.u32 2147483648, %v142_v37  ;;  %v238_v54 = vor.u32 %v237_v41, %v236_v40  ;;  %v241_v56 = vshll.u32 %v240_v42, 23  ;;  %v257_v32 = vand.u32 3, %v256_v14 }
  0xc1   :  { %v331_v60 = vsub.s32 %v327_v52, %v330_v22  ;;  %vm155_vm8 = vcmp.eq.s32.totalorder %v153_v30, 0  ;;  %vm158_vm10 = vcmp.eq.s32.totalorder %v153_v30, 2  ;;  %vm154_vm12 = vcmp.lt.s32.totalorder %v153_v30, 2 }
  0xc2   :  { %v144_v10 = vsel %vm61_vm4, %v143_v46, %v142_v37  ;;  %v242_v58 = vor.u32 4788187, %v241_v56  ;;  %v245_v55 = vcvt.s32.f32 %v238_v54  ;;  %vm262_vm13 = vcmp.eq.s32.totalorder %v257_v32, 2 }
  0xc3   :  { %v147_v51 = vsel %vm632_vm5, %v488_v19, %v144_v10  ;;  %v333_v12 = vsub.s32 0, %v331_v60  ;;  %vm259_vm14 = vcmp.eq.s32.totalorder %v257_v32, 0  ;;  %vm258_vm15 = vcmp.lt.s32.totalorder %v257_v32, 2 }
  0xc4   :  { %422 = vcosq.f32 %v147_v51  ;;  %v243_v59 = vand.u32 2147483647, %v242_v58  ;;  %v353_v52 = vsub.s32 4, %v640_v50 }
  0xc5   :  { %424 = vsinq.f32 %v147_v51  ;;  %v398_v4 = vmin.u32 %v333_v12, %v331_v60 }
  0xc6   :  { %v246_v57 = vmul.f32 %v245_v55, %v243_v59  ;;  %v354_v7 = vsel %vm269_vm1, %v353_v52, %v640_v50 }
  0xc7   :  { %v335_v31 = vclz %v398_v4  ;;  %v356_v10 = vsel %vm268_vm2, 0, %v354_v7 }
  0xc8   :  { %v247_v61 = vxor.u32 2147483648, %v246_v57 }
  0xc9   :  { %v399_v8 = vadd.s32 4294967294, %v335_v31 }
  0xca   :  { %v248_v2 = vsel %vm165_vm6, %v247_v61, %v246_v57  ;;  %vm359_vm6 = vweird.f32 %v492_v21 }
  0xcb   :  { %v251_v3 = vsel %vm649_vm7, %v490_v20, %v248_v2  ;;  %vm400_vm9 = vcmp.lt.s32.totalorder %v399_v8, 0  ;;  %v360_v20 = vadd.s32 3, %v356_v10 }
  0xcc   :  { %426 = vcosq.f32 %v251_v3  ;;  %v338_v15 = vsel %vm400_vm9, 0, %v399_v8 }
  0xcd   :  { %428 = vsinq.f32 %v251_v3  ;;  %v339_v18 = vsub.s32 32, %v338_v15  ;;  %v343_v25 = vsub.s32 4294967266, %v338_v15  ;;  %v340_v23 = vshll.u32 %v331_v60, %v338_v15 }
  0xce   :  { %v361_v43 = vand.u32 3, %v360_v20 }
  0xcf   :  { %v341_v27 = vshrl.u32 %v323_v39, %v339_v18  ;;  %v344_v28 = vadd.s32 127, %v343_v25 }
  0xd0   :  { %vm366_vm3 = vcmp.eq.s32.totalorder %v361_v43, 2  ;;  %vm363_vm4 = vcmp.eq.s32.totalorder %v361_v43, 0  ;;  %vm362_vm5 = vcmp.lt.s32.totalorder %v361_v43, 2 }
  0xd1   :  { %v423_v24 = vpop.eup %422  ;;  %v342_v33 = vor.u32 %v341_v27, %v340_v23  ;;  %v345_v34 = vshll.u32 %v344_v28, 23 }
  0xd2   :  { %v425_v9 = vpop.eup %424  ;;  %v159_v45 = vxor.u32 2147483648, %v423_v24 }
  0xd3   :  { %v156_v13 = vxor.u32 2147483648, %v425_v9  ;;  %v346_v36 = vor.u32 4788187, %v345_v34  ;;  %v349_v40 = vcvt.s32.f32 %v342_v33 }
  0xd4   :  { %v160_v17 = vsel %vm158_vm10, %v159_v45, %v425_v9 }
  0xd5   :  { %v157_v47 = vsel %vm155_vm8, %v423_v24, %v156_v13  ;;  %v347_v16 = vand.u32 2147483647, %v346_v36 }
  0xd6   :  { %v161_v49 = vsel %vm154_vm12, %v157_v47, %v160_v17 }
  0xd7   :  { %v162_v29 = vsel %vm151_vm11, nan, %v161_v49  ;;  %v350_v42 = vmul.f32 %v349_v40, %v347_v16 }
  0xd8   :  { %371 = vst [vmem:[#allocation2] sm:$0xff] %v162_v29 }
  0xd9   :  { %v427_v35 = vpop.eup %426  ;;  %v351_v48 = vxor.u32 2147483648, %v350_v42 }
  0xda   :  { %v429_v37 = vpop.eup %428  ;;  %v263_v38 = vxor.u32 2147483648, %v427_v35 }
  0xdb   :  { %v260_v26 = vxor.u32 2147483648, %v429_v37  ;;  %v352_v54 = vsel %vm269_vm1, %v351_v48, %v350_v42 }
  0xdc   :  { %v264_v19 = vsel %vm262_vm13, %v263_v38, %v429_v37  ;;  %v355_v56 = vsel %vm268_vm2, %v492_v21, %v352_v54 }
  0xdd   :  { %v261_v41 = vsel %vm259_vm14, %v427_v35, %v260_v26  ;;  %430 = vcosq.f32 %v355_v56 }
  0xde   :  { %v265_v44 = vsel %vm258_vm15, %v261_v41, %v264_v19  ;;  %432 = vsinq.f32 %v355_v56 }
  0xdf   :  { %v266_v46 = vsel %vm255_vm0, nan, %v265_v44 }
  0xe0   :  { %372 = vst [vmem:[#allocation2 + $0x8] sm:$0xff] %v266_v46 }
  0xea   :  { %v431_v51 = vpop.eup %430 }
  0xeb   :  { %v433_v58 = vpop.eup %432  ;;  %v367_v53 = vxor.u32 2147483648, %v431_v51 }
  0xec   :  { %v364_v59 = vxor.u32 2147483648, %v433_v58 }
  0xed   :  { %v368_v55 = vsel %vm366_vm3, %v367_v53, %v433_v58 }
  0xee   :  { %v365_v11 = vsel %vm363_vm4, %v431_v51, %v364_v59 }
  0xef   :  { %v369_v22 = vsel %vm362_vm5, %v365_v11, %v368_v55 }
  0xf0   :  { %v370_v50 = vsel %vm359_vm6, nan, %v369_v22 }
  0xf1   :  { %373 = vst [vmem:[#allocation2 + $0x10] sm:$0xff] %v370_v50 }
  0xf2   :  { %445 = shalt.err (!%p442_p4)
}
  0xf3   :  { %383 = dma.vmem_to_hbm [thread:$0]  %s381_s1, 384, %s675_s2, [#allocation3]  }
  0xf4   :  { %454 = dma.done.wait [#allocation3], 384  }
  0xf5   :  { %455 = vsyncadd [#allocation3], 4294966912 }
  0xf6   :  { %387 = vsyncpa [#allocation3], 1 }

</bundles_post_ra>
